<compile_context>
chip_gen: v7x
topology: tpu7x:2x2x1
jax: 0.10.0
libtpu: 0.0.40
codegen_flags: <defaults>
</compile_context>

<pallas_src>
import numpy as np
import jax
import jax.numpy as jnp
from jax.experimental import pallas as pl
from jax.experimental.pallas import tpu as pltpu

PAD_IDX = 1
UNK_IDX = 0
EPS = 1e-8
NEG_INF = -1e30


def _round_up(x, m):
    return ((x + m - 1) // m) * m


def _vmem_capacity_bytes():
    try:
        cap = int(getattr(pltpu.get_tpu_info(), 'vmem_capacity_bytes', 0))
        if cap > 0:
            return cap
    except Exception:
        pass
    return 64 * 1024 * 1024          # conservative fallback (v7x per-TC VMEM)


# --------------------------------------------------------------------------
# Stage 1: one GRU time step per grid iteration.  h carried in VMEM scratch.
# --------------------------------------------------------------------------
def _gru_step_kernel(gi_ref, whht_ref, bhhn_ref, out_ref, h_scr):
    H = whht_ref.shape[0]            # padded per-gate width (multiple of 128)

    @pl.when(pl.program_id(0) == 0)
    def _():
        h_scr[...] = jnp.zeros_like(h_scr)

    h = h_scr[...]                                   # f32 carry
    gi = gi_ref[...]                                 # (MBP, 3H) f32, biases folded
    gh = jnp.dot(h.astype(jnp.bfloat16), whht_ref[...],
                 preferred_element_type=jnp.float32)  # bf16 MXU, f32 acc
    r = jax.nn.sigmoid(gi[:, 0:H] + gh[:, 0:H])
    z = jax.nn.sigmoid(gi[:, H:2 * H] + gh[:, H:2 * H])
    n = jnp.tanh(gi[:, 2 * H:3 * H] + r * (gh[:, 2 * H:3 * H] + bhhn_ref[...]))
    h_new = (1.0 - z) * n + z * h
    h_scr[...] = h_new
    out_ref[...] = h_new.astype(out_ref.dtype)       # bf16 to HBM


# --------------------------------------------------------------------------
# Stage 2: Linear -> cosine sim -> online-LSE weighted cross-entropy,
# gridded over (N tiles, V tiles).
# --------------------------------------------------------------------------
def _decode_loss_kernel(outs_ref, fcwt_ref, fcb_ref, bnt_ref, vbias_ref,
                        tgt_ref, wt_ref, y_ref, stats_ref,
                        a_scr, m_scr, s_scr, tl_scr):
    j = pl.program_id(1)
    TN = outs_ref.shape[0]
    TV = bnt_ref.shape[1]

    @pl.when(j == 0)
    def _():
        # Linear(h -> emb): bf16 MXU operands, f32 accumulate + bias.
        y_fc = jnp.dot(outs_ref[...], fcwt_ref[...],
                       preferred_element_type=jnp.float32) + fcb_ref[...]
        # cosine normalization (rsqrt on the EUP == a / max(||a||, eps)).
        ssq = jnp.sum(y_fc * y_fc, axis=1, keepdims=True)
        a_scr[...] = (y_fc * jax.lax.rsqrt(jnp.maximum(ssq, EPS * EPS))
                      ).astype(a_scr.dtype)
        m_scr[...] = jnp.full((TN, 1), NEG_INF, jnp.float32)
        s_scr[...] = jnp.zeros((TN, 1), jnp.float32)
        tl_scr[...] = jnp.zeros((TN, 1), jnp.float32)

    # cosine similarity vs this V tile of the pre-normalized embedding table.
    sim = jnp.dot(a_scr[...], bnt_ref[...],
                  preferred_element_type=jnp.float32)        # (TN, TV) f32
    y_ref[...] = sim

    sim_l = sim + vbias_ref[...]                             # mask vocab padding

    # target logit for targets that land in this V tile
    col = jax.lax.broadcasted_iota(jnp.int32, (TN, TV), 1) + j * TV
    tgt = tgt_ref[...]                                       # (TN, 1)
    tl_scr[...] = tl_scr[...] + jnp.sum(
        jnp.where(col == tgt, sim, 0.0), axis=1, keepdims=True)

    # online log-sum-exp across V tiles
    m_prev = m_scr[...]
    m_new = jnp.maximum(m_prev, jnp.max(sim_l, axis=1, keepdims=True))
    s_scr[...] = (s_scr[...] * jnp.exp(m_prev - m_new) +
                  jnp.sum(jnp.exp(sim_l - m_new), axis=1, keepdims=True))
    m_scr[...] = m_new

    @pl.when(j == pl.num_programs(1) - 1)
    def _():
        lse = m_scr[...] + jnp.log(s_scr[...])
        nll = lse - tl_scr[...]                              # (TN, 1)
        w = wt_ref[...]                                      # (TN, 1)
        num = jnp.sum(nll * w)
        den = jnp.sum(w)
        # per-N-tile partials in an (8,128)-aligned block: row0=num, row1=den
        rid = jax.lax.broadcasted_iota(jnp.int32, (1, 8, 128), 1)
        stats_ref[...] = (jnp.where(rid == 0, num, 0.0) +
                          jnp.where(rid == 1, den, 0.0))


def _pick_stage2_tiles(n_rows, V, H, E, budget_bytes):
    """Pick (TN, TV) from a VMEM budget (double-buffered pipeline blocks)."""
    tn_cands = [c for c in (1024, 512, 256, 128, 64, 32, 16, 8) if n_rows % c == 0]
    if not tn_cands:
        tn_cands = [n_rows]
    tv_cands = [c for c in (8192, 4096, 2048, 1024, 512, 256, 128) if V % c == 0]
    if not tv_cands:
        tv_cands = [V]

    def vmem_usage(tn, tv):
        dbl = 2
        b = dbl * tn * H * 2                       # GRU outputs tile (bf16)
        b += dbl * (H * E * 2 + E * 4)             # fc weight (bf16) + bias (f32)
        b += dbl * (E * tv * 2 + tv * 4)           # emb^T tile (bf16) + vocab bias
        b += dbl * 2 * tn * 128 * 4                # tgt + w tiles (lane padded)
        b += dbl * tn * tv * 4                     # y tile (f32)
        b += dbl * 8 * 128 * 4                     # loss partial tile
        b += tn * E * 2 + 3 * tn * 128 * 4         # scratch: a_norm + m/s/tl
        return b

    for tn in tn_cands:
        for tv in tv_cands:
            if vmem_usage(tn, tv) <= budget_bytes:
                return tn, tv
    return tn_cands[-1], tv_cands[-1]


# --------------------------------------------------------------------------
# Wrapper
# --------------------------------------------------------------------------
def rnn_lm_forward(x, params):
    """x: (seq_len, mbsize) int32 token ids. Returns {'recon_loss', 'y'}."""
    seq_len, mb = x.shape
    emb = params['emb']
    n_vocab, emb_dim = emb.shape
    h_dim = params['whh'].shape[1]

    # hardware-aligned padded dims
    H = _round_up(h_dim, 128)       # per-gate lane width
    E = _round_up(emb_dim, 128)
    V = _round_up(n_vocab, 128)
    MBP = _round_up(mb, 8)          # sublane-aligned batch
    N_p = seq_len * MBP

    vmem_cap = _vmem_capacity_bytes()
    vmem_limit = int(min(vmem_cap * 3 // 4, 64 * 1024 * 1024))
    budget = (vmem_limit * 3) // 4

    # ---- token / target / weight prep (pure XLA) ----
    x_p = jnp.pad(x.astype(jnp.int32), ((0, 0), (0, MBP - mb)),
                  constant_values=PAD_IDX)
    tgt = jnp.concatenate(
        [x_p[1:], jnp.full((1, MBP), PAD_IDX, dtype=jnp.int32)], axis=0)
    ids = x_p.reshape(N_p)
    tgt_flat = tgt.reshape(N_p, 1)
    w_t = params['class_w'][tgt_flat.reshape(-1)].reshape(N_p, 1)
    w_t = w_t.astype(jnp.float32)

    def pad2(a, r, c):
        return jnp.pad(a, ((0, r - a.shape[0]), (0, c - a.shape[1])))

    # ---- GRU weights: gate-split, lane-padded.  Input projection is fused
    #      with the embedding lookup as an XLA row gather of EW = emb @ Wih^T;
    #      bih and bhh_{r,z} are folded into gi (bhh_n must stay in-kernel). ----
    wih, whh = params['wih'], params['whh']
    bih, bhh = params['bih'], params['bhh']
    ew_g, whht_g, gib_g = [], [], []
    for g in range(3):                       # PyTorch gate order: r, z, n
        wih_gate = wih[g * h_dim:(g + 1) * h_dim]            # (h, emb)
        whh_gate = whh[g * h_dim:(g + 1) * h_dim]            # (h, h)
        ew_g.append(jnp.pad(emb @ wih_gate.T, ((0, 0), (0, H - h_dim))))
        whht_g.append(pad2(whh_gate.T, H, H))
        b = bih[g * h_dim:(g + 1) * h_dim]
        if g < 2:                            # fold bhh_r, bhh_z into gi
            b = b + bhh[g * h_dim:(g + 1) * h_dim]
        gib_g.append(jnp.pad(b, (0, H - h_dim)))
    ew = jnp.concatenate(ew_g, axis=1).astype(jnp.float32)         # (n_vocab, 3H)
    gi_bias = jnp.concatenate(gib_g)[None, :].astype(jnp.float32)  # (1, 3H)
    gi_all = ew[ids] + gi_bias                                     # (N_p, 3H) f32
    whh_t = jnp.concatenate(whht_g, axis=1).astype(jnp.bfloat16)   # (H, 3H) bf16
    bhh_n = jnp.pad(bhh[2 * h_dim:3 * h_dim],
                    (0, H - h_dim))[None, :].astype(jnp.float32)   # (1, H)

    # ---- Stage 1: GRU recurrence, grid over time ----
    outs = pl.pallas_call(
        _gru_step_kernel,
        out_shape=jax.ShapeDtypeStruct((N_p, H), jnp.bfloat16),
        grid=(seq_len,),
        in_specs=[
            pl.BlockSpec((MBP, 3 * H), lambda t: (t, 0)),   # streamed gi block
            pl.BlockSpec((H, 3 * H), lambda t: (0, 0)),     # recurrent weight
            pl.BlockSpec((1, H), lambda t: (0, 0)),         # bhh_n
        ],
        out_specs=pl.BlockSpec((MBP, H), lambda t: (t, 0)),
        scratch_shapes=[pltpu.VMEM((MBP, H), jnp.float32)],  # hidden-state carry
        compiler_params=pltpu.CompilerParams(
            dimension_semantics=("arbitrary",),
            vmem_limit_bytes=vmem_limit),
    )(gi_all, whh_t, bhh_n)

    # ---- decode weights (bf16 MXU operands) ----
    fcw_t = pad2(params['fcw'].T, H, E).astype(jnp.bfloat16)       # (H, E)
    fcb_p = jnp.pad(params['fcb'], (0, E - emb_dim))[None, :].astype(jnp.float32)
    b_n = jnp.sqrt(jnp.sum(emb * emb, axis=1, keepdims=True))
    b_norm = emb / jnp.maximum(b_n, EPS)
    bnt = pad2(b_norm, V, E).T.astype(jnp.bfloat16)                # (E, V)
    vbias = jnp.where(jnp.arange(V) < n_vocab, 0.0, NEG_INF
                      )[None, :].astype(jnp.float32)               # (1, V)

    TN, TV = _pick_stage2_tiles(N_p, V, H, E, budget)
    ni, nj = N_p // TN, V // TV

    # ---- Stage 2: decode + loss, tiled over (N, V) ----
    y_flat, stats = pl.pallas_call(
        _decode_loss_kernel,
        out_shape=(jax.ShapeDtypeStruct((N_p, V), jnp.float32),
                   jax.ShapeDtypeStruct((ni, 8, 128), jnp.float32)),
        grid=(ni, nj),
        in_specs=[
            pl.BlockSpec((TN, H), lambda i, j: (i, 0)),      # GRU outputs tile
            pl.BlockSpec((H, E), lambda i, j: (0, 0)),       # fc weight
            pl.BlockSpec((1, E), lambda i, j: (0, 0)),       # fc bias
            pl.BlockSpec((E, TV), lambda i, j: (0, j)),      # normalized emb^T tile
            pl.BlockSpec((1, TV), lambda i, j: (0, j)),      # vocab-pad bias tile
            pl.BlockSpec((TN, 1), lambda i, j: (i, 0)),      # targets
            pl.BlockSpec((TN, 1), lambda i, j: (i, 0)),      # class weights
        ],
        out_specs=(
            pl.BlockSpec((TN, TV), lambda i, j: (i, j)),         # lane-dense y
            pl.BlockSpec((1, 8, 128), lambda i, j: (i, 0, 0)),   # loss partials
        ),
        scratch_shapes=[
            pltpu.VMEM((TN, E), jnp.bfloat16),   # normalized decode vectors
            pltpu.VMEM((TN, 1), jnp.float32),    # online max
            pltpu.VMEM((TN, 1), jnp.float32),    # online sum
            pltpu.VMEM((TN, 1), jnp.float32),    # target logit
        ],
        compiler_params=pltpu.CompilerParams(
            dimension_semantics=("parallel", "arbitrary"),
            vmem_limit_bytes=vmem_limit),
    )(outs, fcw_t, fcb_p, bnt, vbias, tgt_flat, w_t)

    num = jnp.sum(stats[:, 0, 0])
    den = jnp.sum(stats[:, 1, 0])
    loss = num / den

    y = y_flat.reshape(seq_len, MBP, V)[:, :mb, :n_vocab]
    return {'recon_loss': loss, 'y': y}


# --------------------------------------------------------------------------
# Parameter init (mirrors the PyTorch module defaults)
# --------------------------------------------------------------------------
def init_params(key, n_vocab, h_dim, emb_dim):
    keys = jax.random.split(key, 7)
    # nn.Embedding: N(0,1), padding row zeroed; UNK row is also N(0,1)
    emb = jax.random.normal(keys[0], (n_vocab, emb_dim), jnp.float32)
    emb = emb.at[PAD_IDX].set(0.0)
    k = 1.0 / np.sqrt(h_dim)
    wih = jax.random.uniform(keys[1], (3 * h_dim, emb_dim), jnp.float32, -k, k)
    whh = jax.random.uniform(keys[2], (3 * h_dim, h_dim), jnp.float32, -k, k)
    bih = jax.random.uniform(keys[3], (3 * h_dim,), jnp.float32, -k, k)
    bhh = jax.random.uniform(keys[4], (3 * h_dim,), jnp.float32, -k, k)
    fcw = jax.random.uniform(keys[5], (emb_dim, h_dim), jnp.float32, -k, k)
    fcb = jax.random.uniform(keys[6], (emb_dim,), jnp.float32, -k, k)
    class_w = jnp.ones((n_vocab,), jnp.float32).at[PAD_IDX].set(0.0)
    return dict(emb=emb, wih=wih, whh=whh, bih=bih, bhh=bhh,
                fcw=fcw, fcb=fcb, class_w=class_w)


def reference_forward(x, p):
    """Pure-JAX reference mirroring the PyTorch forward()."""
    seq_len, mb = x.shape
    emb = p['emb']
    n_vocab, emb_dim = emb.shape
    h_dim = p['whh'].shape[1]
    inputs_emb = emb[x]                                   # (seq, mb, emb_dim)
    h = jnp.zeros((mb, h_dim), jnp.float32)
    outs = []
    for t in range(seq_len):
        gi = inputs_emb[t] @ p['wih'].T + p['bih']
        gh = h @ p['whh'].T + p['bhh']
        r = jax.nn.sigmoid(gi[:, :h_dim] + gh[:, :h_dim])
        z = jax.nn.sigmoid(gi[:, h_dim:2 * h_dim] + gh[:, h_dim:2 * h_dim])
        n = jnp.tanh(gi[:, 2 * h_dim:] + r * gh[:, 2 * h_dim:])
        h = (1.0 - z) * n + z * h
        outs.append(h)
    outputs = jnp.stack(outs).reshape(seq_len * mb, h_dim)
    y_fc = outputs @ p['fcw'].T + p['fcb']
    a_n = jnp.linalg.norm(y_fc, axis=1, keepdims=True)
    a_norm = y_fc / jnp.maximum(a_n, EPS)
    b_n = jnp.linalg.norm(emb, axis=1, keepdims=True)
    b_norm = emb / jnp.maximum(b_n, EPS)
    sim = a_norm @ b_norm.T
    y = sim.reshape(seq_len, mb, n_vocab)
    tgt = jnp.concatenate([x[1:], jnp.full((1, mb), PAD_IDX, x.dtype)],
                          axis=0).reshape(-1)
    logp = jax.nn.log_softmax(sim, axis=-1)
    nll = -jnp.take_along_axis(logp, tgt[:, None], axis=1)[:, 0]
    w = p['class_w'][tgt]
    loss = jnp.sum(nll * w) / jnp.sum(w)
    return {'y': y, 'recon_loss': loss}


if __name__ == "__main__":
    n_vocab, h_dim, seq_len, mb = 128, 32, 8, 2
    emb_dim = h_dim

    key = jax.random.PRNGKey(0)
    kp, kx = jax.random.split(key)
    params = init_params(kp, n_vocab, h_dim, emb_dim)
    # token ids (avoid the special ids 0..3 for the inputs)
    x = jax.random.randint(kx, (seq_len, mb), 4, n_vocab, dtype=jnp.int32)

    out = rnn_lm_forward(x, params)
    y = jax.block_until_ready(out['y'])
    loss = jax.block_until_ready(out['recon_loss'])

    ref = reference_forward(x, params)
    # slightly looser y tolerance: recurrence + decode use bf16 MXU operands
    np.testing.assert_allclose(np.asarray(y), np.asarray(ref['y']),
                               atol=3e-2, rtol=3e-2)
    np.testing.assert_allclose(float(loss), float(ref['recon_loss']),
                               atol=2e-2, rtol=2e-2)
    assert np.all(np.isfinite(np.asarray(y)))
    assert np.isfinite(float(loss))
    print("KERNEL_OK")
</pallas_src>

<mosaic_0001>
module attributes {stable_mosaic.version = 11 : i64} {
  func.func @_gru_step_kernel(%arg0: i32, %arg1: memref<8x384xf32, #tpu.memory_space<vmem>>, %arg2: memref<128x384xbf16, #tpu.memory_space<vmem>>, %arg3: memref<1x128xf32, #tpu.memory_space<vmem>>, %arg4: memref<8x128xbf16, #tpu.memory_space<vmem>>, %arg5: memref<8x128xf32, #tpu.memory_space<vmem>>) attributes {dimension_semantics = [#tpu.dimension_semantics<arbitrary>], iteration_bounds = array<i64: 8>, scalar_prefetch = 0 : i64, scratch_operands = 1 : i64, tpu.core_type = #tpu.core_type<tc>, window_params = [{transform_indices = @transform_0, window_bounds = array<i64: 8, 384>}, {pipeline_mode = #tpu.pipeline_mode<synchronous>, transform_indices = @transform_1, window_bounds = array<i64: 128, 384>}, {pipeline_mode = #tpu.pipeline_mode<synchronous>, transform_indices = @transform_2, window_bounds = array<i64: 1, 128>}, {transform_indices = @transform_3, window_bounds = array<i64: 8, 128>}]} {
    %c0_i32 = arith.constant 0 : i32
    %0 = arith.cmpi eq, %arg0, %c0_i32 : i32
    %1 = arith.extui %0 : i1 to i32
    %c0_i32_0 = arith.constant 0 : i32
    %2 = arith.cmpi ne, %1, %c0_i32_0 : i32
    scf.if %2 {
      %cst_15 = arith.constant 0.000000e+00 : f32
      %40 = vector.broadcast %cst_15 : f32 to vector<8x128xf32>
      %c0_16 = arith.constant 0 : index
      %c0_17 = arith.constant 0 : index
      %41 = vector.load %arg5[%c0_16, %c0_17] : memref<8x128xf32, #tpu.memory_space<vmem>>, vector<8x128xf32>
      tpu.vector_store %arg5[%c0_16, %c0_17], %40 {strides = array<i32>} : memref<8x128xf32, #tpu.memory_space<vmem>>, vector<8x128xf32>,
    } else {
    }
    %c0 = arith.constant 0 : index
    %c0_1 = arith.constant 0 : index
    %3 = vector.load %arg5[%c0, %c0_1] : memref<8x128xf32, #tpu.memory_space<vmem>>, vector<8x128xf32>
    %c0_2 = arith.constant 0 : index
    %c0_3 = arith.constant 0 : index
    %4 = vector.load %arg1[%c0_2, %c0_3] : memref<8x384xf32, #tpu.memory_space<vmem>>, vector<8x384xf32>
    %5 = arith.truncf %3 : vector<8x128xf32> to vector<8x128xbf16>
    %c0_4 = arith.constant 0 : index
    %c0_5 = arith.constant 0 : index
    %6 = vector.load %arg2[%c0_4, %c0_5] : memref<128x384xbf16, #tpu.memory_space<vmem>>, vector<128x384xbf16>
    %cst = arith.constant dense<0.000000e+00> : vector<8x384xf32>
    %7 = tpu.matmul %5, %6, %cst {dimension_numbers = #tpu.dot_dimension_numbers<[1], [0], [0], [1], [0, 0, 1, 1], [], []>} : vector<8x128xbf16>, vector<128x384xbf16>, vector<8x384xf32> -> vector<8x384xf32>
    %8 = vector.extract_strided_slice %4 {offsets = [0, 0], sizes = [8, 128], strides = [1, 1]} : vector<8x384xf32> to vector<8x128xf32>
    %9 = vector.extract_strided_slice %7 {offsets = [0, 0], sizes = [8, 128], strides = [1, 1]} : vector<8x384xf32> to vector<8x128xf32>
    %10 = arith.addf %8, %9 : vector<8x128xf32>
    %11 = arith.negf %10 : vector<8x128xf32>
    %12 = math.exp %11 : vector<8x128xf32>
    %cst_6 = arith.constant 1.000000e+00 : f32
    %13 = vector.broadcast %cst_6 : f32 to vector<8x128xf32>
    %14 = arith.addf %13, %12 : vector<8x128xf32>
    %15 = arith.divf %13, %14 : vector<8x128xf32>
    %16 = vector.extract_strided_slice %4 {offsets = [0, 128], sizes = [8, 128], strides = [1, 1]} : vector<8x384xf32> to vector<8x128xf32>
    %17 = vector.extract_strided_slice %7 {offsets = [0, 128], sizes = [8, 128], strides = [1, 1]} : vector<8x384xf32> to vector<8x128xf32>
    %18 = arith.addf %16, %17 : vector<8x128xf32>
    %19 = arith.negf %18 : vector<8x128xf32>
    %20 = math.exp %19 : vector<8x128xf32>
    %cst_7 = arith.constant 1.000000e+00 : f32
    %21 = vector.broadcast %cst_7 : f32 to vector<8x128xf32>
    %22 = arith.addf %21, %20 : vector<8x128xf32>
    %23 = arith.divf %21, %22 : vector<8x128xf32>
    %24 = vector.extract_strided_slice %4 {offsets = [0, 256], sizes = [8, 128], strides = [1, 1]} : vector<8x384xf32> to vector<8x128xf32>
    %25 = vector.extract_strided_slice %7 {offsets = [0, 256], sizes = [8, 128], strides = [1, 1]} : vector<8x384xf32> to vector<8x128xf32>
    %c0_8 = arith.constant 0 : index
    %c0_9 = arith.constant 0 : index
    %26 = vector.load %arg3[%c0_8, %c0_9] : memref<1x128xf32, #tpu.memory_space<vmem>>, vector<1x128xf32>
    %27 = vector.broadcast %26 : vector<1x128xf32> to vector<8x128xf32>
    %28 = arith.addf %25, %27 : vector<8x128xf32>
    %29 = arith.mulf %15, %28 : vector<8x128xf32>
    %30 = arith.addf %24, %29 : vector<8x128xf32>
    %31 = math.tanh %30 : vector<8x128xf32>
    %cst_10 = arith.constant 1.000000e+00 : f32
    %32 = vector.broadcast %cst_10 : f32 to vector<8x128xf32>
    %33 = arith.subf %32, %23 : vector<8x128xf32>
    %34 = arith.mulf %33, %31 : vector<8x128xf32>
    %35 = arith.mulf %23, %3 : vector<8x128xf32>
    %36 = arith.addf %34, %35 : vector<8x128xf32>
    %c0_11 = arith.constant 0 : index
    %c0_12 = arith.constant 0 : index
    %37 = vector.load %arg5[%c0_11, %c0_12] : memref<8x128xf32, #tpu.memory_space<vmem>>, vector<8x128xf32>
    tpu.vector_store %arg5[%c0_11, %c0_12], %36 {strides = array<i32>} : memref<8x128xf32, #tpu.memory_space<vmem>>, vector<8x128xf32>,
    %38 = arith.truncf %36 : vector<8x128xf32> to vector<8x128xbf16>
    %c0_13 = arith.constant 0 : index
    %c0_14 = arith.constant 0 : index
    %39 = vector.load %arg4[%c0_13, %c0_14] : memref<8x128xbf16, #tpu.memory_space<vmem>>, vector<8x128xbf16>
    tpu.vector_store %arg4[%c0_13, %c0_14], %38 {strides = array<i32>} : memref<8x128xbf16, #tpu.memory_space<vmem>>, vector<8x128xbf16>,
    return
  }
  func.func @transform_0(%arg0: i32) -> (i32, i32) {
    %c0_i32 = arith.constant 0 : i32
    %c0_i32_0 = arith.constant 0 : i32
    return %arg0, %c0_i32 : i32, i32
  }
  func.func @transform_1(%arg0: i32) -> (i32, i32) {
    %c0_i32 = arith.constant 0 : i32
    %c0_i32_0 = arith.constant 0 : i32
    %c0_i32_1 = arith.constant 0 : i32
    return %c0_i32, %c0_i32_0 : i32, i32
  }
  func.func @transform_2(%arg0: i32) -> (i32, i32) {
    %c0_i32 = arith.constant 0 : i32
    %c0_i32_0 = arith.constant 0 : i32
    %c0_i32_1 = arith.constant 0 : i32
    return %c0_i32, %c0_i32_0 : i32, i32
  }
  func.func @transform_3(%arg0: i32) -> (i32, i32) {
    %c0_i32 = arith.constant 0 : i32
    %c0_i32_0 = arith.constant 0 : i32
    return %arg0, %c0_i32 : i32, i32
  }
}

</mosaic_0001>

<bundles_post_ra>
// kernel: tpu_custom_call.1
= control target key start
LH: loop header
LB: loop body
LE: loop exit
PB: predicated region body
PF: predicated region fallthrough
CT: control target
= control target key end

     0   :  { %8 = vsyncpa [#allocation4], 0  ;;  %s1119_s0 = inlined_call_operand.hbm [shape: f32[64,384], index: 0, kind: input, shape index: {}]   ;;  %s1120_s1 = inlined_call_operand.hbm [shape: bf16[128,384], index: 1, kind: input, shape index: {}]   ;;  %s1121_s2 = inlined_call_operand.vmem [shape: f32[1,128], index: 2, kind: input, shape index: {}]   ;;  %s1122_s3 = inlined_call_operand.hbm [shape: bf16[64,128], index: 3, kind: output, shape index: {}]  }
   0x1   :  { %10 = vsyncpa [#allocation4 + $0x1], 0 }
   0x2   :  { %11 = vsyncpa [#allocation7], 0 }
   0x3   :  { %12 = vsyncpa [#allocation5], 0 }
   0x4   :  { %14 = vsyncpa [#allocation5 + $0x1], 0  ;;  %s916_s12 = smov 0   ;;  %s918_s13 = smov 0  }
   0x5   :  { %s920_s14 = smov 0   ;;  %s922_s15 = smov 0  }
   0x6 LB: > { %s937_s16 = sadd.s32 4294967295, %s885_s15   ;;  %s580_s17 = sadd.s32 4294967294, %s885_s15   ;;  %s885_s15 = sphi %s922_s15, %s1142_s15   ;;  %s881_s14 = sphi %s920_s14, %s1141_s14   ;;  %s877_s13 = sphi %s918_s13, %s1140_s13   ;;  %s873_s12 = sphi %s916_s12, %s1139_s12  }
   0x7   : > { %p40_p0 = scmp.ne.s32.totalorder %s877_s13, %s873_s12  ;;  %p1123_p1 = scmp.eq.s32.totalorder %s937_s16, 0 }
   0x8   : > { %p112_p3 = scmp.eq.s32.totalorder %s580_s17, 7  ;;  %p581_p5 = scmp.ge.s32.totalorder %s885_s15, 1 }
   0x9   : > { %p946_p4 = por %p1123_p1, %p40_p0  ;;  %p119_p7 = scmp.lt.s32.totalorder %s885_s15, 9 }
   0xa   : > { %p951_p6 = por %p112_p3, %p40_p0  ;;  %s887_s21 = smov [#allocation6]  }
   0xb   : > { %s1126_s18 = scalar_select %p946_p4, 1, 0 }
   0xc   : > { %s1127_s19 = scalar_select %p951_p6, 1, 0 }
   0xd   : > { %p957_p9 = pnand %p581_p5, %p119_p7  ;;  %s131_s22 = sshll.u32 %s887_s21, 4  ;;  %s132_s22 = int_to_ptr.vmem [resolvable:$true] %s131_s22 }
   0xe   : > { %s970_s24 = sadd.s32 1, %s885_s15   ;;  %s27_s25 = sadd.s32 1, %s881_s14 }
   0xf   : > { %s1128_s20 = scalar_select %p957_p9, 1, 0 }
  0x10   : > { %p660_p10 = pneg %p957_p9  ;;  %s24_s26 = ssub.s32 %s885_s15, %s970_s24 }
  0x11   : > { %s757_s29 = scalar_lea.hbm %s1120_s1, 3072 }
  0x12   : > { %p965_p11 = pnand %p660_p10, %p1123_p1  ;;  %p758_p12 = scmp.ne.s32.totalorder %s1120_s1, %s757_s29 }
  0x13   : > { %p764_p5 = scmp.lt.u32.totalorder %s757_s29, %s1120_s1 }
  0x14   : > { %p759_p13 = pneg %p965_p11 }
  0x16   : > { %p760_p0 = pnand %p759_p13, %p758_p12 }
  0x18   : > { %p761_p3 = pneg %p760_p0 }
  0x1a   : > { %p766_p7 = pnand %p764_p5, %p761_p3 }
  0x1c   : > { %769 = shalt.err (!%p766_p7)
}
  0x1d   : > { %s770_s7 = scalar_lea.vmem %s132_s22, 3072  ;;  %p778_p2 = scmp.lt.s32.totalorder %s132_s22, %s132_s22 }
  0x1e   : > { %p771_p10 = scmp.ne.s32.totalorder %s132_s22, %s770_s7  ;;  %p779_p6 = scmp.lt.s32.totalorder %s770_s7, %s770_s7 }
  0x20   : > { %p773_p8 = pnand %p771_p10, %p759_p13  ;;  %p780_p4 = por %p779_p6, %p778_p2 }
  0x22   : > { %p774_p1 = pneg %p773_p8 }
  0x24   : > { %p781_p9 = pnand %p780_p4, %p774_p1 }
  0x26   : > { %784 = shalt.err (!%p781_p9)
}
  0x27   : > { %s888_s8 = smov 192   ;;  %s889_s9 = smov 12  }
  0x28   : > { %663 = dma.hbm_to_vmem [thread:$0]  (!%p965_p11), %s1120_s1, 3072, %s132_s22, [#allocation7], %s888_s8, %s888_s8, %s889_s9  }
  0x29   : > { %p25_p8 = scmp.eq.s32.totalorder %s24_s26, 0  ;;  %p34_p2 = scmp.ne.s32.totalorder %s881_s14, %s877_s13 }
  0x2a   : > { %p35_p1 = scmp.eq.s32.totalorder %s885_s15, 0  ;;  %p673_p4 = scmp.lt.s32.totalorder %s885_s15, 8 }
  0x2b   : > { %s996_s17 = scalar_select %p25_p8, %s881_s14, %s27_s25  }
  0x2c   : > { %p36_p6 = por %p35_p1, %p34_p2  ;;  %p1130_p9 = scmp.eq.s32.totalorder %s937_s16, 7 }
  0x2d   : > { %s148_s27 = sand.u32 1, %s881_s14   ;;  %s650_s28 = smul.u32 384, %s885_s15 }
  0x2e   : > { %p1000_p12 = por %p1130_p9, %p34_p2  ;;  %s649_s29 = smul.u32 24, %s148_s27 }
  0x2f   : > { %p1006_p13 = pnand %p673_p4, %p36_p6  ;;  %s1013_s25 = scalar_lea.hbm %s1119_s0, %s650_s28 }
  0x30   : > { %s152_s30 = scalar_lea.vmem [#allocation3], %s649_s29  ;;  %s149_s5 = scalar_lea.sflag [#allocation4], %s148_s27 }
  0x31   : > { %s160_s4 = sshll.u32 %s152_s30, 4  ;;  %s785_s6 = scalar_lea.hbm %s1013_s25, 384  ;;  %s1015_s4 = int_to_ptr.vmem [resolvable:$true] %s160_s4 }
  0x32   : > { %p786_p11 = scmp.ne.s32.totalorder %s1013_s25, %s785_s6  ;;  %p787_p0 = pneg %p1006_p13 }
  0x33   : > { %s790_s9 = scalar_lea.hbm %s1119_s0, 3072  ;;  %p791_p7 = scmp.lt.u32.totalorder %s1013_s25, %s1119_s0 }
  0x34   : > { %p788_p3 = pnand %p787_p0, %p786_p11  ;;  %p792_p10 = scmp.lt.u32.totalorder %s790_s9, %s785_s6 }
  0x35   : > { %p794_p2 = scmp.lt.u32.totalorder %s785_s6, %s1013_s25 }
  0x36   : > { %p789_p5 = pneg %p788_p3  ;;  %p793_p8 = por %p792_p10, %p791_p7 }
  0x38   : > { %p795_p1 = por %p794_p2, %p793_p8 }
  0x3a   : > { %p796_p4 = pnand %p795_p1, %p789_p5 }
  0x3c   : > { %799 = shalt.err (!%p796_p4)
}
  0x3d   : > { %s800_s27 = scalar_lea.vmem %s1015_s4, 384  ;;  %s890_s28 = smov [#allocation3]  }
  0x3e   : > { %p801_p6 = scmp.ne.s32.totalorder %s1015_s4, %s800_s27  ;;  %s805_s29 = sshll.u32 %s890_s28, 4  ;;  %s806_s29 = int_to_ptr.vmem [resolvable:$false] %s805_s29 }
  0x3f   : > { %s807_s22 = scalar_lea.vmem %s806_s29, 768  ;;  %p808_p3 = scmp.lt.s32.totalorder %s1015_s4, %s806_s29 }
  0x40   : > { %p803_p9 = pnand %p801_p6, %p787_p0  ;;  %p809_p7 = scmp.lt.s32.totalorder %s807_s22, %s800_s27 }
  0x42   : > { %p804_p11 = pneg %p803_p9  ;;  %p810_p10 = por %p809_p7, %p808_p3 }
  0x44   : > { %p811_p8 = pnand %p810_p10, %p804_p11 }
  0x46   : > { %814 = shalt.err (!%p811_p8)
}
  0x47   : > { %667 = dma.hbm_to_vmem [thread:$0]  (!%p1006_p13), %s1013_s25, 384, %s1015_s4, %s149_s5  }
  0x48   : > { %p1133_p5 = scmp.ne.s32.totalorder %s1128_s20, 0 }
  0x49   : > { %s1045_s26 = sand.u32 (!%p1133_p5), 1, %s877_s13   ;;  %p1134_p0 = scmp.ne.s32.totalorder (!%p1133_p5), %s1126_s18, 0 }
  0x4a   : > { %169 = sbr.rel (%p1133_p5) target bundleno = 403 (0x193), region = 32  ;;  %s172_s6 = scalar_lea.sflag (!%p1133_p5), [#allocation4], %s1045_s26 }
  0x4b   : > { %s651_s30 = smul.u32 (!%p1133_p5), 24, %s1045_s26 }
  0x4d   : > { %s1049_s7 = scalar_lea.vmem (!%p1133_p5), [#allocation3], %s651_s30 }
  0x51   : > { %860 = dma.done.wait (%p1134_p0), %s172_s6, 384  }
  0x52   : > { %862 = vsyncadd (%p1134_p0), %s172_s6, 4294966912  ;;  %p1135_p13 = scmp.eq.s32.totalorder %s937_s16, 0 }
  0x54   : > { %864 = dma.done.wait (%p1135_p13), [#allocation7], 3072   ;;  %p1136_p2 = pmov %p1135_p13 }
  0x55   : > { %s587_s20 = sshll.u32 %s1045_s26, 2  ;;  %p1137_p1 = scmp.ne.s32.totalorder %s937_s16, 0 }
  0x56   : > { %866 = vsyncadd (%p1136_p2), [#allocation7], 4294964224  ;;  %s1060_s23 = scalar_lea.vmem [#allocation8], %s587_s20  ;;  %v891_v0 = vmov (!%p1137_p1), 0.0  }
  0x57   : > { %206 = sbr.rel (%p1137_p1) target bundleno = 94 (0x5e), region = 44  ;;  %207 = vst [vmem:[#allocation2] sm:$0xff] (!%p1137_p1), %v891_v0 }
  0x5e PF: > { %v715_v1 = vld [vmem:[#allocation6 + $0x4] ss:$12 sps:$4 sm:$0xff]   ;;  %v717_v2 = vld [vmem:[#allocation6] ss:$12 sps:$4 sm:$0xff]   ;;  %v892_v3 = vmov 0.0   ;;  %v893_v4 = vmov 0  }
  0x5f   : > { %629 = vmatprep.subr.bf16.mxu1 %v892_v3  ;;  %405 = vmatprep.mubr.bf16.mxu0 %v893_v4  ;;  %v718_v5 = vld [vmem:[#allocation6 + $0x1c] ss:$12 sps:$4 sm:$0xff]   ;;  %vm894_vm0 = vmmov 0   ;;  %v720_v6 = vld [vmem:[#allocation6 + $0x18] ss:$12 sps:$4 sm:$0xff]   ;;  %s617_s4 = sshll.u32 %s937_s16, 6 }
  0x60   : > { %373 = vmatprep.subr.bf16.mxu0 %v715_v1  ;;  %645 = vmatprep.mubr.msk.bf16.mxu1 %vm894_vm0, %v892_v3  ;;  %v721_v7 = vld [vmem:[#allocation6 + $0x34] ss:$12 sps:$4 sm:$0xff]   ;;  %v723_v8 = vld [vmem:[#allocation6 + $0x30] ss:$12 sps:$4 sm:$0xff]   ;;  %v724_v9 = vld [vmem:[#allocation6 + $0x4c] ss:$12 sps:$4 sm:$0xff]   ;;  %s1075_s10 = scalar_lea.hbm %s1122_s3, %s617_s4 }
  0x61   : > { %374 = vmatpush1.bf16.msra.mxu0 %v717_v2  ;;  %v735_v10 = vld [vmem:[#allocation6 + $0x8] ss:$12 sps:$4 sm:$0xff]   ;;  %v727_v12 = vld [vmem:[#allocation6 + $0x64] ss:$12 sps:$4 sm:$0xff]   ;;  %v739_v13 = vld [vmem:[#allocation6 + $0x20] ss:$12 sps:$4 sm:$0xff]  }
  0x62   : > { %375 = vmatprep.subr.bf16.mxu0 %v718_v5  ;;  %v726_v11 = vld [vmem:[#allocation6 + $0x48] ss:$12 sps:$4 sm:$0xff]   ;;  %630 = vmatpush3.bf16.msra.mxu1 %v735_v10  ;;  %v729_v14 = vld [vmem:[#allocation6 + $0x60] ss:$12 sps:$4 sm:$0xff]   ;;  %v741_v15 = vld [vmem:[#allocation6 + $0x38] ss:$12 sps:$4 sm:$0xff]  }
  0x63   : > { %631 = vmatprep.subr.bf16.mxu1 %v892_v3  ;;  %v730_v16 = vld [vmem:[#allocation6 + $0x7c] ss:$12 sps:$4 sm:$0xff]   ;;  %v732_v17 = vld [vmem:[#allocation6 + $0x78] ss:$12 sps:$4 sm:$0xff]   ;;  %v733_v19 = vld [vmem:[#allocation6 + $0x94] ss:$12 sps:$4 sm:$0xff]  }
  0x64   : > { %v742_v18 = vld [vmem:[#allocation6 + $0x50] ss:$12 sps:$4 sm:$0xff]   ;;  %v743_v21 = vld [vmem:[#allocation6 + $0x68] ss:$12 sps:$4 sm:$0xff]   ;;  %v737_v22 = vld [vmem:[#allocation6 + $0xac] ss:$12 sps:$4 sm:$0xff]  }
  0x65   : > { %376 = vmatpush1.bf16.msra.mxu0 %v720_v6  ;;  %v736_v20 = vld [vmem:[#allocation6 + $0x90] ss:$12 sps:$4 sm:$0xff]   ;;  %v740_v23 = vld [vmem:[#allocation6 + $0xa8] ss:$12 sps:$4 sm:$0xff]   ;;  %v744_v25 = vld [vmem:[#allocation6 + $0x80] ss:$12 sps:$4 sm:$0xff]  }
  0x66   : > { %377 = vmatprep.subr.bf16.mxu0 %v721_v7  ;;  %632 = vmatpush3.bf16.msra.mxu1 %v739_v13  ;;  %v208_v24 = vld [vmem:[#allocation2] sm:$0xff]  ;;  %v745_v27 = vld [vmem:[#allocation6 + $0x98] ss:$12 sps:$4 sm:$0xff]   ;;  %v746_v28 = vld [vmem:[#allocation6 + $0xb0] ss:$12 sps:$4 sm:$0xff]   ;;  %s500_s5 = sshll.u32 %s1060_s23, 4  ;;  %s1077_s5 = int_to_ptr.vmem [resolvable:$true] %s500_s5 }
  0x67   : > { %633 = vmatprep.subr.bf16.mxu1 %v892_v3  ;;  %v212_v26 = vpack.c.bf16 %v208_v24, %v208_v24  ;;  %v209_v29 = vld [vmem:[%s1049_s7] sm:$0xff]  ;;  %v210_v32 = vld [vmem:[%s1049_s7 + $0x8] sm:$0xff]  ;;  %v211_v50 = vld [vmem:[%s1049_s7 + $0x10] sm:$0xff]  ;;  %s487_s11 = scalar_lea.sflag [#allocation5], %s1045_s26  ;;  %s815_s27 = scalar_lea.vmem %s1077_s5, 64 }
  0x68   : > { %v615_v46 = vld [vmem:[%s1121_s2] ss:$0 sm:$0xff]  ;;  %p816_p4 = scmp.ne.s32.totalorder %s1077_s5, %s815_s27  ;;  %s895_s16 = smov [#allocation8]  }
  0x69   : > { %378 = vmatpush1.bf16.msra.mxu0 %v723_v8  ;;  %s819_s28 = sshll.u32 %s895_s16, 4  ;;  %s820_s28 = int_to_ptr.vmem [resolvable:$false] %s819_s28 }
  0x6a   : > { %379 = vmatprep.subr.bf16.mxu0 %v724_v9  ;;  %634 = vmatpush3.bf16.msra.mxu1 %v741_v15  ;;  %p817_p6 = pnand %p816_p4, %p1000_p12  ;;  %s821_s29 = scalar_lea.vmem %s820_s28, 128 }
  0x6b   : > { %635 = vmatprep.subr.bf16.mxu1 %v892_v3  ;;  %p822_p11 = scmp.lt.s32.totalorder %s1077_s5, %s820_s28  ;;  %p823_p3 = scmp.lt.s32.totalorder %s821_s29, %s815_s27 }
  0x6c   : > { %p818_p9 = pneg %p817_p6 }
  0x6d   : > { %380 = vmatpush1.bf16.msra.mxu0 %v726_v11  ;;  %p824_p7 = por %p823_p3, %p822_p11 }
  0x6e   : > { %381 = vmatprep.subr.bf16.mxu0 %v727_v12  ;;  %636 = vmatpush3.bf16.msra.mxu1 %v742_v18 }
  0x6f   : > { %637 = vmatprep.subr.bf16.mxu1 %v892_v3  ;;  %p825_p10 = pnand %p824_p7, %p818_p9 }
  0x71   : > { %382 = vmatpush1.bf16.msra.mxu0 %v729_v14 }
  0x72   : > { %383 = vmatprep.subr.bf16.mxu0 %v730_v16  ;;  %638 = vmatpush3.bf16.msra.mxu1 %v743_v21 }
  0x73   : > { %639 = vmatprep.subr.bf16.mxu1 %v892_v3 }
  0x75   : > { %384 = vmatpush1.bf16.msra.mxu0 %v732_v17 }
  0x76   : > { %385 = vmatprep.subr.bf16.mxu0 %v733_v19  ;;  %640 = vmatpush3.bf16.msra.mxu1 %v744_v25 }
  0x77   : > { %641 = vmatprep.subr.bf16.mxu1 %v892_v3 }
  0x79   : > { %386 = vmatpush1.bf16.msra.mxu0 %v736_v20 }
  0x7a   : > { %387 = vmatprep.subr.bf16.mxu0 %v737_v22  ;;  %642 = vmatpush3.bf16.msra.mxu1 %v745_v27 }
  0x7b   : > { %643 = vmatprep.subr.bf16.mxu1 %v892_v3 }
  0x7d   : > { %388 = vmatpush1.bf16.msra.mxu0 %v740_v23 }
  0x7e   : > { %644 = vmatpush3.bf16.msra.mxu1 %v746_v28 }
  0x80   : > { %406 = vmatmul.mubr.bf16.vlgmr.msra.gmra.mrb[0].mxu0 %v212_v26 }
  0x81   : > { %646 = vmatmul.mubr.bf16.vlgmr.msra.gmra.mrb[0].mxu1 %v212_v26 }
 0x153   : > { %v407_v30 = vpop.f32.mrb[0].mxu0 }
 0x154   : > { %v454_v31 = vadd.f32 %v407_v30, %v209_v29  ;;  %v409_v33 = vpop.f32.mrb[1].mxu0  ;;  %v448_v39 = vpop.f32.mrb[0].mxu1 }
 0x155   : > { %v411_v34 = vpop.f32.mrb[2].mxu0  ;;  %v461_v37 = vadd.f32 %v409_v33, %v210_v32  ;;  %v647_v40 = vpop.f32.mrb[1].mxu1  ;;  %v475_v48 = vadd.f32 %v615_v46, %v448_v39 }
 0x156   : > { %v613_v35 = vmul.f32 -1.442695, %v454_v31  ;;  %v412_v36 = vpop.f32.mrb[3].mxu0  ;;  %v451_v41 = vpop.f32.mrb[2].mxu1 }
 0x157   : > { %v614_v38 = vmul.f32 -1.442695, %v461_v37  ;;  %v648_v42 = vpop.f32.mrb[3].mxu1 }
 0x158   : > { %747 = vpow2.f32 %v613_v35 }
 0x159   : > { %749 = vpow2.f32 %v614_v38 }
 0x162   : > { %v748_v43 = vpop.eup %747 }
 0x163   : > { %v458_v44 = vadd.f32 1.0, %v748_v43  ;;  %v750_v45 = vpop.eup %749 }
 0x164   : > { %v465_v47 = vadd.f32 1.0, %v750_v45 }
 0x165   : > { %751 = vrcp.f32 %v458_v44 }
 0x166   : > { %753 = vrcp.f32 %v465_v47 }
 0x16f   : > { %v752_v49 = vpop.eup %751 }
 0x170   : > { %v476_v51 = vmul.f32 %v752_v49, %v475_v48  ;;  %v754_v53 = vpop.eup %753 }
 0x171   : > { %v479_v54 = vsub.f32 1.0, %v754_v53  ;;  %v481_v57 = vmul.f32 %v754_v53, %v208_v24 }
 0x172   : > { %v477_v52 = vadd.f32 %v476_v51, %v211_v50 }
 0x174   : > { %755 = vtanh.f32 %v477_v52 }
 0x17e   : > { %v756_v55 = vpop.eup %755 }
 0x17f   : > { %v480_v56 = vmul.f32 %v756_v55, %v479_v54 }
 0x181   : > { %v482_v58 = vadd.f32 %v481_v57, %v480_v56 }
 0x183   : > { %483 = vst [vmem:[#allocation2] sm:$0xff] %v482_v58  ;;  %v484_v59 = vpack.c.bf16 %v482_v58, %v482_v58 }
 0x185   : > { %485 = vst [vmem:[%s1060_s23] sm:$0xf] %v484_v59 }
 0x186   : > { %828 = shalt.err (!%p825_p10)
}
 0x187   : > { %s829_s22 = scalar_lea.hbm %s1075_s10, 64  ;;  %s833_s6 = scalar_lea.hbm %s1122_s3, 512 }
 0x188   : > { %p830_p8 = scmp.ne.s32.totalorder %s1075_s10, %s829_s22  ;;  %p834_p13 = scmp.lt.u32.totalorder %s1075_s10, %s1122_s3 }
 0x189   : > { %p835_p2 = scmp.lt.u32.totalorder %s833_s6, %s829_s22  ;;  %p837_p4 = scmp.lt.u32.totalorder %s829_s22, %s1075_s10 }
 0x18a   : > { %p831_p5 = pnand %p830_p8, %p1000_p12 }
 0x18b   : > { %p836_p1 = por %p835_p2, %p834_p13 }
 0x18c   : > { %p832_p0 = pneg %p831_p5 }
 0x18d   : > { %p838_p6 = por %p837_p4, %p836_p1 }
 0x18f   : > { %p839_p9 = pnand %p838_p6, %p832_p0 }
 0x191   : > { %842 = shalt.err (!%p839_p9)
}
 0x192   : > { %658 = dma.vmem_to_hbm [thread:$0]  (%p1000_p12), %s1077_s5, 64, %s1075_s10, %s487_s11  }
 0x193 PF: > { %p675_p11 = scmp.ge.s32.totalorder %s885_s15, 2  ;;  %s512_s23 = sand.u32 1, %s873_s12  }
 0x194   : > { %p1138_p3 = scmp.ne.s32.totalorder %s1127_s19, 0  ;;  %s513_s18 = scalar_lea.sflag [#allocation5], %s512_s23 }
 0x196   : > { %p669_p7 = pnand %p675_p11, %p1138_p3 }
 0x198   : > { %868 = dma.done.wait (!%p669_p7), %s513_s18, 64  }
 0x199   : > { %870 = vsyncadd (!%p669_p7), %s513_s18, 4294967232  ;;  %p17_p10 = scmp.ge.s32.totalorder %s970_s24, 10   ;;  %s1139_s12 = smov %s877_s13 }
 0x19a   : > { %s1140_s13 = smov %s881_s14  ;;  %s1141_s14 = smov %s996_s17 }
 0x19b   : > { %s1142_s15 = smov %s970_s24  ;;  %19 = sbr.rel (!%p17_p10) target bundleno = 6 (0x6), region = 85 }
 0x1a2   :  { %518 = vsyncpa [#allocation4], 1 }
 0x1a3   :  { %520 = vsyncpa [#allocation4 + $0x1], 1 }
 0x1a4   :  { %521 = vsyncpa [#allocation7], 1 }
 0x1a5   :  { %522 = vsyncpa [#allocation5], 1 }
 0x1a6   :  { %524 = vsyncpa [#allocation5 + $0x1], 1 }

</bundles_post_ra>
